<compile_context>
chip_gen: v6e
topology: v6e:2x2x1
jax: 0.10.0
libtpu: 0.0.40
codegen_flags: <defaults>
</compile_context>

<pallas_src>
import jax
import jax.numpy as jnp
from jax.experimental import pallas as pl
from jax.experimental.pallas import tpu as pltpu


def _round_up(x, m):
    return (x + m - 1) // m * m


def _sublane_pack(dtype):
    # Sublane packing factor: 8 for 32-bit, 16 for 16-bit, 32 for 8-bit dtypes.
    return {4: 8, 2: 16, 1: 32}.get(jnp.dtype(dtype).itemsize, 8)


def _lora_linear_kernel(x_ref, w_ref, b_ref, xa_ref, wb_ref, o_ref):
    # x_ref : (tm, Din)   w_ref : (Din, tn)   b_ref : (1, tn)
    # xa_ref: (tm, r)     (already holds scaling * (x @ W_a))
    # wb_ref: (r, tn)     o_ref : (tm, tn)
    acc = jnp.dot(x_ref[...], w_ref[...], preferred_element_type=jnp.float32)
    acc += jnp.dot(xa_ref[...], wb_ref[...], preferred_element_type=jnp.float32)
    o_ref[...] = (acc + b_ref[...].astype(jnp.float32)).astype(o_ref.dtype)


def _plain_linear_kernel(x_ref, w_ref, b_ref, o_ref):
    acc = jnp.dot(x_ref[...], w_ref[...], preferred_element_type=jnp.float32)
    o_ref[...] = (acc + b_ref[...].astype(jnp.float32)).astype(o_ref.dtype)


def linear_with_lora(x, w_t, b_lin, w_a=None, w_b=None, *, alpha=1, rank=0,
                     tm=512, tn=512, compute_dtype=None):
    """LinearWithLoRA forward.

    x      : (..., Din)
    w_t    : (Din, Dout)  -- base linear weight, stored pre-transposed from
                             PyTorch nn.Linear's (Dout, Din) layout.
    b_lin  : (Dout,)
    w_a    : (Din, rank)   w_b : (rank, Dout)   (ignored if rank <= 0)
    compute_dtype : optional dtype (e.g. jnp.bfloat16) for the MXU operands;
                    accumulation stays f32, output keeps x.dtype.
    """
    orig_shape = x.shape
    d_in = orig_shape[-1]
    d_out = w_t.shape[1]
    out_dtype = x.dtype
    op_dtype = compute_dtype if compute_dtype is not None else x.dtype
    op_bytes = jnp.dtype(op_dtype).itemsize
    out_bytes = jnp.dtype(out_dtype).itemsize
    has_lora = rank > 0
    r = int(w_a.shape[1]) if has_lora else 0

    xm = x.reshape(-1, d_in)
    m = xm.shape[0]

    # ---- tile selection -----------------------------------------------------
    row_align = _sublane_pack(op_dtype)
    tm = _round_up(max(row_align, min(tm, _round_up(m, row_align))), row_align)
    tn = _round_up(min(tn, _round_up(d_out, 128)), 128)

    # VMEM budget derived from the actual chip (0.8x capacity, never physical).
    capacity = 64 * 1024 * 1024
    try:
        capacity = int(pltpu.get_tpu_info().vmem_capacity_bytes)
    except Exception:
        pass
    budget = int(0.8 * capacity)

    def _footprint(tm_, tn_):
        blk = (tm_ * d_in * op_bytes       # x tile
               + d_in * tn_ * op_bytes     # W tile
               + tn_ * 4)                  # bias tile
        if has_lora:
            blk += tm_ * r * op_bytes + r * tn_ * op_bytes
        return 2 * (blk + tm_ * tn_ * out_bytes)   # double-buffered pipeline

    while _footprint(tm, tn) > budget:
        if tn >= 512:
            tn //= 2
        elif tm > row_align:
            tm = _round_up(max(row_align, tm // 2), row_align)
        elif tn > 128:
            tn //= 2
        else:
            break

    fp = _footprint(tm, tn)
    soft_cap = int(0.85 * capacity)
    vmem_limit = int(min(soft_cap, max(32 * 1024 * 1024, fp + 8 * 1024 * 1024)))

    # ---- padding to the tile grid -------------------------------------------
    m_pad = _round_up(m, tm)
    n_pad = _round_up(d_out, tn)

    if m_pad != m:
        xm = jnp.pad(xm, ((0, m_pad - m), (0, 0)))

    b2 = b_lin.reshape(1, d_out)
    w_t_p = w_t
    if n_pad != d_out:
        # Real transformer layers have Dout % 128 == 0; small-shape fallback.
        w_t_p = jnp.pad(w_t_p, ((0, 0), (0, n_pad - d_out)))
        b2 = jnp.pad(b2, ((0, 0), (0, n_pad - d_out)))

    xm_op = xm.astype(op_dtype)
    w_t_p = w_t_p.astype(op_dtype)

    params = pltpu.CompilerParams(
        dimension_semantics=("parallel", "parallel"),
        vmem_limit_bytes=vmem_limit,
    )

    if has_lora:
        scaling = float(alpha) / float(rank)
        # LoRA down-projection hoisted out of the kernel: a tiny (M, r) GEMM.
        # `scaling` is folded in here (once), padded rows are zero.
        xa = jnp.dot(xm.astype(jnp.float32), w_a.astype(jnp.float32),
                     preferred_element_type=jnp.float32) * scaling
        xa = xa.astype(op_dtype)

        w_b_p = w_b
        if n_pad != d_out:
            w_b_p = jnp.pad(w_b_p, ((0, 0), (0, n_pad - d_out)))
        w_b_p = w_b_p.astype(op_dtype)

        out = pl.pallas_call(
            _lora_linear_kernel,
            out_shape=jax.ShapeDtypeStruct((m_pad, n_pad), out_dtype),
            grid_spec=pltpu.PrefetchScalarGridSpec(
                num_scalar_prefetch=0,
                grid=(m_pad // tm, n_pad // tn),
                in_specs=[
                    pl.BlockSpec((tm, d_in), lambda i, j: (i, 0)),  # x
                    pl.BlockSpec((d_in, tn), lambda i, j: (0, j)),  # W
                    pl.BlockSpec((1, tn), lambda i, j: (0, j)),     # bias
                    pl.BlockSpec((tm, r), lambda i, j: (i, 0)),     # xa
                    pl.BlockSpec((r, tn), lambda i, j: (0, j)),     # W_b
                ],
                out_specs=pl.BlockSpec((tm, tn), lambda i, j: (i, j)),
            ),
            compiler_params=params,
        )(xm_op, w_t_p, b2, xa, w_b_p)
    else:
        # rank == 0: LoRA contributes exactly zero -> plain GEMM + bias kernel.
        out = pl.pallas_call(
            _plain_linear_kernel,
            out_shape=jax.ShapeDtypeStruct((m_pad, n_pad), out_dtype),
            grid_spec=pltpu.PrefetchScalarGridSpec(
                num_scalar_prefetch=0,
                grid=(m_pad // tm, n_pad // tn),
                in_specs=[
                    pl.BlockSpec((tm, d_in), lambda i, j: (i, 0)),  # x
                    pl.BlockSpec((d_in, tn), lambda i, j: (0, j)),  # W
                    pl.BlockSpec((1, tn), lambda i, j: (0, j)),     # bias
                ],
                out_specs=pl.BlockSpec((tm, tn), lambda i, j: (i, j)),
            ),
            compiler_params=params,
        )(xm_op, w_t_p, b2)

    out = out[:m, :d_out]
    return out.reshape(*orig_shape[:-1], d_out)


if __name__ == "__main__":
    # Small shapes consistent with a transformer linear: (B, S, Din) -> (B, S, Dout).
    # S=9 makes B*S=18 not divisible by the row tile, exercising the padded path.
    B, S, D_IN, D_OUT = 2, 9, 32, 64
    RANK, ALPHA = 4, 8

    key = jax.random.PRNGKey(0)
    kx, kw, kb, ka, kb2 = jax.random.split(key, 5)

    x = jax.random.normal(kx, (B, S, D_IN), dtype=jnp.float32)

    # nn.Linear params in PyTorch layout: weight (out, in), bias (out,).
    w_lin = jax.random.normal(kw, (D_OUT, D_IN), dtype=jnp.float32) * 0.05
    b_lin = jax.random.normal(kb, (D_OUT,), dtype=jnp.float32) * 0.1

    # LoRALayer params: W_a (Din, r) ~ randn/sqrt(r); W_b is zero-init in the
    # module -- small random values used here so the LoRA path is exercised.
    w_a = jax.random.normal(ka, (D_IN, RANK), dtype=jnp.float32) / jnp.sqrt(RANK)
    w_b = jax.random.normal(kb2, (RANK, D_OUT), dtype=jnp.float32) * 0.02

    # Pre-transpose the base weight ONCE (in production it is stored this way).
    w_t = jnp.asarray(w_lin.T)

    # Pure-JAX reference.
    scaling = ALPHA / RANK
    ref = x @ w_lin.T + b_lin + scaling * ((x @ w_a) @ w_b)

    # f32 run: strict correctness.
    out = linear_with_lora(x, w_t, b_lin, w_a, w_b, alpha=ALPHA, rank=RANK)
    out = jax.block_until_ready(out)
    assert out.shape == (B, S, D_OUT)
    assert jnp.allclose(out, ref, atol=1e-4, rtol=1e-4), "f32 mismatch vs reference"

    # bf16 MXU operands with f32 accumulation (production setting on v6e/v7x).
    out_bf16 = linear_with_lora(x, w_t, b_lin, w_a, w_b, alpha=ALPHA, rank=RANK,
                                compute_dtype=jnp.bfloat16)
    out_bf16 = jax.block_until_ready(out_bf16)
    assert jnp.allclose(out_bf16, ref, atol=5e-2, rtol=5e-2), "bf16 mismatch vs reference"

    # rank == 0 path: pure linear (LoRA contributes zero), static separate kernel.
    out0 = linear_with_lora(x, w_t, b_lin, None, None, alpha=1, rank=0)
    out0 = jax.block_until_ready(out0)
    ref0 = x @ w_lin.T + b_lin
    assert jnp.allclose(out0, ref0, atol=1e-4, rtol=1e-4), "rank-0 mismatch vs reference"

    print("KERNEL_OK")
</pallas_src>

<mosaic_0001>
module attributes {stable_mosaic.version = 11 : i64} {
  func.func @_lora_linear_kernel(%arg0: i32, %arg1: i32, %arg2: memref<24x32xf32, #tpu.memory_space<vmem>>, %arg3: memref<32x128xf32, #tpu.memory_space<vmem>>, %arg4: memref<1x128xf32, #tpu.memory_space<vmem>>, %arg5: memref<24x4xf32, #tpu.memory_space<vmem>>, %arg6: memref<4x128xf32, #tpu.memory_space<vmem>>, %arg7: memref<24x128xf32, #tpu.memory_space<vmem>>) attributes {dimension_semantics = [#tpu.dimension_semantics<parallel>, #tpu.dimension_semantics<parallel>], iteration_bounds = array<i64: 1, 1>, scalar_prefetch = 0 : i64, scratch_operands = 0 : i64, tpu.core_type = #tpu.core_type<tc>, window_params = [{transform_indices = @transform_0, window_bounds = array<i64: 24, 32>}, {transform_indices = @transform_1, window_bounds = array<i64: 32, 128>}, {transform_indices = @transform_2, window_bounds = array<i64: 1, 128>}, {transform_indices = @transform_3, window_bounds = array<i64: 24, 4>}, {transform_indices = @transform_4, window_bounds = array<i64: 4, 128>}, {transform_indices = @transform_5, window_bounds = array<i64: 24, 128>}]} {
    %c0 = arith.constant 0 : index
    %c0_0 = arith.constant 0 : index
    %0 = vector.load %arg2[%c0, %c0_0] : memref<24x32xf32, #tpu.memory_space<vmem>>, vector<24x32xf32>
    %c0_1 = arith.constant 0 : index
    %c0_2 = arith.constant 0 : index
    %1 = vector.load %arg3[%c0_1, %c0_2] : memref<32x128xf32, #tpu.memory_space<vmem>>, vector<32x128xf32>
    %cst = arith.constant dense<0.000000e+00> : vector<24x128xf32>
    %2 = tpu.matmul %0, %1, %cst {dimension_numbers = #tpu.dot_dimension_numbers<[1], [0], [0], [1], [0, 0, 1, 1], [], []>} : vector<24x32xf32>, vector<32x128xf32>, vector<24x128xf32> -> vector<24x128xf32>
    %c0_3 = arith.constant 0 : index
    %c0_4 = arith.constant 0 : index
    %3 = vector.load %arg5[%c0_3, %c0_4] : memref<24x4xf32, #tpu.memory_space<vmem>>, vector<24x4xf32>
    %c0_5 = arith.constant 0 : index
    %c0_6 = arith.constant 0 : index
    %4 = vector.load %arg6[%c0_5, %c0_6] : memref<4x128xf32, #tpu.memory_space<vmem>>, vector<4x128xf32>
    %cst_7 = arith.constant dense<0.000000e+00> : vector<24x128xf32>
    %5 = tpu.matmul %3, %4, %cst_7 {dimension_numbers = #tpu.dot_dimension_numbers<[1], [0], [0], [1], [0, 0, 1, 1], [], []>} : vector<24x4xf32>, vector<4x128xf32>, vector<24x128xf32> -> vector<24x128xf32>
    %6 = arith.addf %2, %5 : vector<24x128xf32>
    %c0_8 = arith.constant 0 : index
    %c0_9 = arith.constant 0 : index
    %7 = vector.load %arg4[%c0_8, %c0_9] : memref<1x128xf32, #tpu.memory_space<vmem>>, vector<1x128xf32>
    %8 = vector.broadcast %7 : vector<1x128xf32> to vector<24x128xf32>
    %9 = arith.addf %6, %8 : vector<24x128xf32>
    %c0_10 = arith.constant 0 : index
    %c0_11 = arith.constant 0 : index
    %10 = vector.load %arg7[%c0_10, %c0_11] : memref<24x128xf32, #tpu.memory_space<vmem>>, vector<24x128xf32>
    tpu.vector_store %arg7[%c0_10, %c0_11], %9 {strides = array<i32>} : memref<24x128xf32, #tpu.memory_space<vmem>>, vector<24x128xf32>,
    return
  }
  func.func @transform_0(%arg0: i32, %arg1: i32) -> (i32, i32) {
    %c0_i32 = arith.constant 0 : i32
    %c0_i32_0 = arith.constant 0 : i32
    return %arg0, %c0_i32 : i32, i32
  }
  func.func @transform_1(%arg0: i32, %arg1: i32) -> (i32, i32) {
    %c0_i32 = arith.constant 0 : i32
    %c0_i32_0 = arith.constant 0 : i32
    return %c0_i32, %arg1 : i32, i32
  }
  func.func @transform_2(%arg0: i32, %arg1: i32) -> (i32, i32) {
    %c0_i32 = arith.constant 0 : i32
    %c0_i32_0 = arith.constant 0 : i32
    return %c0_i32, %arg1 : i32, i32
  }
  func.func @transform_3(%arg0: i32, %arg1: i32) -> (i32, i32) {
    %c0_i32 = arith.constant 0 : i32
    %c0_i32_0 = arith.constant 0 : i32
    return %arg0, %c0_i32 : i32, i32
  }
  func.func @transform_4(%arg0: i32, %arg1: i32) -> (i32, i32) {
    %c0_i32 = arith.constant 0 : i32
    %c0_i32_0 = arith.constant 0 : i32
    return %c0_i32, %arg1 : i32, i32
  }
  func.func @transform_5(%arg0: i32, %arg1: i32) -> (i32, i32) {
    %c0_i32 = arith.constant 0 : i32
    return %arg0, %arg1 : i32, i32
  }
}

</mosaic_0001>

<bundles_post_ra>
// kernel: tpu_custom_call.1
= control target key start
LH: loop header
LB: loop body
LE: loop exit
PB: predicated region body
PF: predicated region fallthrough
CT: control target
= control target key end

     0   :  { %10 = vsyncpa [#allocation3], 0  ;;  %s438_s0 = inlined_call_operand.vmem [shape: f32[24,32], index: 0, kind: input, shape index: {}]   ;;  %s439_s1 = inlined_call_operand.hbm [shape: f32[32,128], index: 1, kind: input, shape index: {}]   ;;  %s440_s2 = inlined_call_operand.vmem [shape: f32[1,128], index: 2, kind: input, shape index: {}]   ;;  %s441_s3 = inlined_call_operand.vmem [shape: f32[24,4], index: 3, kind: input, shape index: {}]   ;;  %s442_s4 = inlined_call_operand.vmem [shape: f32[4,128], index: 4, kind: input, shape index: {}]   ;;  %s443_s5 = inlined_call_operand.hbm [shape: f32[24,128], index: 5, kind: output, shape index: {}]  }
   0x1   :  { %11 = vsyncpa [#allocation4], 0  ;;  %s357_s18 = smov [#allocation2]  }
   0x2   :  { %s19_s19 = sshll.u32 %s357_s18, 4  ;;  %s20_s19 = int_to_ptr.vmem [resolvable:$true] %s19_s19 }
   0x3   :  { %s321_s20 = scalar_lea.vmem %s20_s19, 512  ;;  %p326_p1 = scmp.lt.s32.totalorder %s20_s19, %s20_s19 }
   0x4   :  { %p322_p0 = scmp.ne.s32.totalorder %s20_s19, %s321_s20  ;;  %p327_p2 = scmp.lt.s32.totalorder %s321_s20, %s321_s20 }
   0x6   :  { %p328_p3 = por %p327_p2, %p326_p1 }
   0x8   :  { %p329_p4 = pnand %p328_p3, %p322_p0 }
   0xa   :  { %332 = shalt.err (!%p329_p4)
}
   0xb   :  { %s358_s21 = smov 128   ;;  %s359_s22 = smov 8  }
   0xc   :  { %25 = dma.hbm_to_vmem [thread:$0]  %s439_s1, 512, %s20_s19, [#allocation3], %s358_s21, %s358_s21, %s359_s22  }
   0xd   :  { %353 = dma.done.wait [#allocation3], 512  }
   0xe   :  { %354 = vsyncadd [#allocation3], 4294966784  ;;  %v360_v0 = vmov 0.0   ;;  %vm361_vm0 = vmmov 0   ;;  %vm56_vm1 = vcmask 1043456   ;;  %vm46_vm2 = vcmask 31744  }
   0xf   :  { %290 = vmatprep.subr.mxu1 %v360_v0  ;;  %279 = vmatprep.subr.mxu0 %v360_v0  ;;  %v41_v1 = vld [vmem:[#allocation2 + $0x18] sm:$0xff]  ;;  %v40_v2 = vld [vmem:[#allocation2 + $0x10] sm:$0xff]  ;;  %v45_v3 = vld [vmem:[%s442_s4] sm:$0xf]  ;;  %vm140_vm3 = vcmask 261120  }
  0x10   :  { %281 = vmatprep.mubr.msk.f32.mxu0 %vm361_vm0, %v360_v0  ;;  %298 = vmatprep.mubr.msk.f32.mxu1 %vm361_vm0, %v360_v0  ;;  %v42_v4 = vld [vmem:[%s441_s3] sm:$0xff]  ;;  %v39_v5 = vld [vmem:[#allocation2 + $0x8] sm:$0xff]  ;;  %v44_v9 = vld [vmem:[%s441_s3 + $0x10] sm:$0xff] }
  0x11   :  { %291 = vmatpush3.msra.mxu1 %v41_v1  ;;  %280 = vmatpush3.msk.msra.mxu0 %vm56_vm1, %v45_v3  ;;  %v43_v6 = vld [vmem:[%s441_s3 + $0x8] sm:$0xff]  ;;  %v38_v7 = vld [vmem:[#allocation2] sm:$0xff]  ;;  %v37_v11 = vld [vmem:[%s438_s0 + $0x10] sm:$0xff] }
  0x12   :  { %292 = vmatprep.subr.mxu1 %v360_v0  ;;  %282 = vmatmul.mubr.msk.f32.vlgmr.msra.gmra.mxu0 %vm46_vm2, %v42_v4  ;;  %v35_v8 = vld [vmem:[%s438_s0] sm:$0xff]  ;;  %v36_v10 = vld [vmem:[%s438_s0 + $0x8] sm:$0xff]  ;;  %s362_s0 = smov [#allocation5]  }
  0x13   :  { %293 = vmatpush3.msra.mxu1 %v40_v2  ;;  %284 = vmatprep.mubr.msk.f32.mxu0 %vm361_vm0, %v360_v0  ;;  %v267_v16 = vld [vmem:[%s440_s2] ss:$0 sm:$0xff]  ;;  %s248_s13 = sshll.u32 %s362_s0, 4  ;;  %s249_s13 = int_to_ptr.vmem [resolvable:$true] %s248_s13 }
  0x14   :  { %294 = vmatprep.subr.mxu1 %v360_v0  ;;  %s333_s2 = scalar_lea.vmem %s249_s13, 384  ;;  %p338_p6 = scmp.lt.s32.totalorder %s249_s13, %s249_s13 }
  0x15   :  { %295 = vmatpush3.msra.mxu1 %v39_v5  ;;  %p334_p5 = scmp.ne.s32.totalorder %s249_s13, %s333_s2  ;;  %p339_p7 = scmp.lt.s32.totalorder %s333_s2, %s333_s2 }
  0x16   :  { %296 = vmatprep.subr.mxu1 %v360_v0  ;;  %285 = vmatmul.mubr.msk.f32.gmra.mxu0 %vm46_vm2, %v43_v6 }
  0x17   :  { %297 = vmatpush3.msra.mxu1 %v38_v7  ;;  %287 = vmatprep.mubr.msk.f32.mxu0 %vm361_vm0, %v360_v0  ;;  %p340_p8 = por %p339_p7, %p338_p6 }
  0x18   :  { %299 = vmatmul.mubr.msk.f32.vlgmr.msra.gmra.mxu1 %vm140_vm3, %v35_v8 }
  0x19   :  { %301 = vmatprep.mubr.msk.f32.mxu1 %vm361_vm0, %v360_v0  ;;  %p341_p9 = pnand %p340_p8, %p334_p5 }
  0x1a   :  { %288 = vmatmul.mubr.msk.f32.gmra.mxu0 %vm46_vm2, %v44_v9 }
  0x1c   :  { %302 = vmatmul.mubr.msk.f32.gmra.mxu1 %vm140_vm3, %v36_v10 }
  0x1d   :  { %304 = vmatprep.mubr.msk.f32.mxu1 %vm361_vm0, %v360_v0 }
  0x20   :  { %305 = vmatmul.mubr.msk.f32.gmra.mxu1 %vm140_vm3, %v37_v11 }
  0xd2   :  { %v126_v12 = vpop.f32.mrf.mxu0 }
  0xd4   :  { %v283_v13 = vpop.f32.mrf.mxu0 }
  0xd6   :  { %v131_v14 = vpop.f32.mrf.mxu0 }
  0xd8   :  { %v216_v15 = vpop.f32.mrf.mxu1  ;;  %v286_v17 = vpop.f32.mrf.mxu0 }
  0xd9   :  { %v217_v18 = vadd.f32 %v216_v15, %v126_v12 }
  0xda   :  { %v300_v19 = vpop.f32.mrf.mxu1  ;;  %v136_v20 = vpop.f32.mrf.mxu0 }
  0xdb   :  { %v237_v21 = vadd.f32 %v267_v16, %v217_v18 }
  0xdc   :  { %v221_v22 = vpop.f32.mrf.mxu1  ;;  %v289_v23 = vpop.f32.mrf.mxu0 }
  0xdd   :  { %240 = vst [vmem:[#allocation5] sm:$0xff] %v237_v21  ;;  %v222_v24 = vadd.f32 %v221_v22, %v131_v14 }
  0xde   :  { %v303_v25 = vpop.f32.mrf.mxu1 }
  0xdf   :  { %v238_v26 = vadd.f32 %v267_v16, %v222_v24 }
  0xe0   :  { %v226_v27 = vpop.f32.mrf.mxu1 }
  0xe1   :  { %241 = vst [vmem:[#allocation5 + $0x8] sm:$0xff] %v238_v26  ;;  %v227_v28 = vadd.f32 %v226_v27, %v136_v20 }
  0xe2   :  { %v306_v29 = vpop.f32.mrf.mxu1 }
  0xe3   :  { %v239_v30 = vadd.f32 %v267_v16, %v227_v28 }
  0xe5   :  { %242 = vst [vmem:[#allocation5 + $0x10] sm:$0xff] %v239_v30 }
  0xe6   :  { %344 = shalt.err (!%p341_p9)
}
  0xe7   :  { %254 = dma.vmem_to_hbm [thread:$0]  %s249_s13, 384, %s443_s5, [#allocation4], %s358_s21, %s358_s21, %s359_s22  }
  0xe8   :  { %355 = dma.done.wait [#allocation4], 384  }
  0xe9   :  { %356 = vsyncadd [#allocation4], 4294966912 }
  0xea   :  { %258 = vsyncpa [#allocation3], 1 }
  0xeb   :  { %259 = vsyncpa [#allocation4], 1 }

</bundles_post_ra>
